<compile_context>
chip_gen: v5e
topology: v5e:2x2
jax: 0.10.0
libtpu: 0.0.40
codegen_flags: <defaults>
</compile_context>

<pallas_src>
import functools

import jax
import jax.numpy as jnp
from jax.experimental import pallas as pl
from jax.experimental.pallas import tpu as pltpu


def _round_up(x, m):
    return (x + m - 1) // m * m


def _vmem_capacity_bytes():
    """Physical VMEM per core, with a conservative (v7x) fallback."""
    try:
        cap = int(getattr(pltpu.get_tpu_info(), "vmem_capacity_bytes", 0))
        if cap > 0:
            return cap
    except Exception:
        pass
    return 64 * 1024 * 1024


# --------------------------------------------------------------------------- kernels


def _svm_kernel_single(x_ref, wt_ref, b_ref, o_ref):
    # Whole reduction in one tile: direct dot + bias, no accumulator scratch.
    # x_ref: (tm, K), wt_ref: (K, N) [VMEM-resident, constant block], b_ref: (1, N)
    o_ref[...] = (
        jnp.dot(x_ref[...], wt_ref[...], preferred_element_type=jnp.float32)
        + b_ref[...]
    ).astype(o_ref.dtype)


def _svm_kernel_multi(x_ref, wt_ref, b_ref, o_ref, acc_ref, *, tk, k_rem, resident):
    # K tiled along grid axis 1 (trailing, "arbitrary") with an f32 VMEM accumulator.
    # resident=True : wt_ref is the full (K_pad, N) weight, DMA'd once; slice K chunk here.
    # resident=False: wt_ref is the streamed (tk, N) weight tile for this K step.
    k = pl.program_id(1)
    nk = pl.num_programs(1)

    x = x_ref[...]
    if k_rem:
        # The last K tile of x reads past K in HBM (unspecified values); zero the tail
        # columns.  The weight's K dim is zero-padded in the wrapper, so padded rows
        # contribute exactly 0 (no NaN from garbage * 0).
        lim = jnp.where(k == nk - 1, k_rem, tk)
        col = jax.lax.broadcasted_iota(jnp.int32, x.shape, 1)
        x = jnp.where(col < lim, x, jnp.zeros_like(x))

    if resident:
        koff = pl.multiple_of(k * tk, 128)
        w = wt_ref[pl.ds(koff, tk), :]
    else:
        w = wt_ref[...]

    partial = jnp.dot(x, w, preferred_element_type=jnp.float32)

    @pl.when(k == 0)
    def _():
        # Fold the bias into the accumulator init (saves a zero-fill pass and a
        # separate bias-add pass in the epilogue).
        acc_ref[...] = partial + b_ref[...]

    @pl.when(k != 0)
    def _():
        acc_ref[...] += partial

    @pl.when(k == nk - 1)
    def _():
        o_ref[...] = acc_ref[...].astype(o_ref.dtype)


# --------------------------------------------------------------------------- planning


def _plan_tiles(M, K, N, tm=None, tk=None):
    itemsize = 4  # f32
    vmem_cap = _vmem_capacity_bytes()
    n_lanes = _round_up(N, 128)                  # VMEM lane footprint of the class dim
    budget = int(vmem_cap * 0.55)                # what pipelined buffers may occupy
    vmem_limit = min(int(vmem_cap * 0.75), 96 * 1024 * 1024)

    # --- batch tile -----------------------------------------------------------------
    if tm is None:
        # Large enough to amortize per-step overhead / fill the MXU, but always >= 2
        # M tiles when the batch allows it (v7x megacore sharding of the parallel axis).
        tm_cap = 1024 if vmem_cap >= 96 * 1024 * 1024 else 512
        tm = min(tm_cap, _round_up(pl.cdiv(M, 2), 8), _round_up(M, 8))
        tm = max(8, tm)
        # Safety: shrink tm if the tk-independent buffers (out x2 + acc + bias) are big
        # (only matters for very large num_classes).
        while tm > 8 and (3 * tm * n_lanes + 16 * n_lanes) * itemsize > budget // 2:
            tm = max(8, _round_up(tm // 2, 8))
    else:
        tm = max(8, min(_round_up(tm, 8), _round_up(M, 8)))

    fixed = (3 * tm * n_lanes + 16 * n_lanes) * itemsize

    # --- K tile ---------------------------------------------------------------------
    # Solve 2*tm*tk (x double buffer) + 2*tk*n_lanes (streamed/resident weight) <= rest.
    tk_room = max(budget - fixed, 0) // (2 * (tm + n_lanes) * itemsize)
    tk_max = max(128, min(4096, (tk_room // 128) * 128))

    if tk is not None:
        if tk >= K:
            tk = None          # fall through to the single-tile path below
        else:
            tk = max(128, (tk // 128) * 128)

    if tk is None:
        if K <= tk_max:
            return dict(tm=tm, tk=K, k_pad=K, k_rem=0, single=True, resident=True,
                        vmem_limit=vmem_limit)
        # Prefer an exact divisor of K (no remainder masking needed).
        for cand in (4096, 2048, 1024, 512, 256, 128):
            if cand <= tk_max and K % cand == 0:
                tk = cand
                break
        if tk is None:
            tk = tk_max        # bounded tile; remainder handled by pad + mask

    k_pad = _round_up(K, tk)
    k_rem = K % tk

    # Keep the weight fully VMEM-resident (single DMA) if it fits the leftover budget;
    # otherwise stream (tk, N) weight tiles along the K axis.
    used = fixed + 2 * tm * tk * itemsize
    resident = 2 * k_pad * n_lanes * itemsize <= max(budget - used, 0)

    return dict(tm=tm, tk=tk, k_pad=k_pad, k_rem=k_rem, single=False,
                resident=resident, vmem_limit=vmem_limit)


# --------------------------------------------------------------------------- wrapper


def svm_forward(x, weight, bias, *, tm=None, tk=None):
    """y = x @ weight.T + bias with weight in PyTorch (num_classes, input_size) layout."""
    M, K = x.shape
    N = weight.shape[0]
    assert weight.shape == (N, K) and bias.shape == (N,)

    plan = _plan_tiles(M, K, N, tm=tm, tk=tk)
    tm, tk = plan["tm"], plan["tk"]
    k_pad, k_rem = plan["k_pad"], plan["k_rem"]
    single, resident = plan["single"], plan["resident"]

    # One-time (cheap) weight prep: transpose to (K, N) so the MXU RHS is in its native
    # orientation; zero-pad the K dim only when the last K tile is partial.
    wt = weight.T
    if k_pad != K:
        wt = jnp.pad(wt, ((0, k_pad - K), (0, 0)))
    b2 = bias.reshape(1, N)

    m_tiles = pl.cdiv(M, tm)
    k_tiles = pl.cdiv(k_pad, tk)

    weight_reads = 1 if (single or resident) else m_tiles
    cost = pl.CostEstimate(
        flops=2 * M * K * N,
        transcendentals=0,
        bytes_accessed=(x.size * x.dtype.itemsize
                        + weight_reads * wt.size * wt.dtype.itemsize
                        + b2.size * b2.dtype.itemsize
                        + M * N * x.dtype.itemsize),
    )

    if single:
        kernel = _svm_kernel_single
        grid = (m_tiles,)
        in_specs = [
            pl.BlockSpec((tm, K), lambda i: (i, 0)),     # x: streamed over the batch
            pl.BlockSpec((K, N), lambda i: (0, 0)),      # weight: constant block -> one DMA
            pl.BlockSpec((1, N), lambda i: (0, 0)),      # bias
        ]
        out_specs = pl.BlockSpec((tm, N), lambda i: (i, 0))
        scratch_shapes = []
        dim_sem = ("parallel",)
    else:
        kernel = functools.partial(_svm_kernel_multi, tk=tk, k_rem=k_rem,
                                   resident=resident)
        grid = (m_tiles, k_tiles)
        if resident:
            w_spec = pl.BlockSpec((k_pad, N), lambda i, k: (0, 0))   # fully VMEM-resident
        else:
            w_spec = pl.BlockSpec((tk, N), lambda i, k: (k, 0))      # streamed K tiles
        in_specs = [
            pl.BlockSpec((tm, tk), lambda i, k: (i, k)),
            w_spec,
            pl.BlockSpec((1, N), lambda i, k: (0, 0)),
        ]
        out_specs = pl.BlockSpec((tm, N), lambda i, k: (i, 0))
        scratch_shapes = [pltpu.VMEM((tm, N), jnp.float32)]
        dim_sem = ("parallel", "arbitrary")

    return pl.pallas_call(
        kernel,
        out_shape=jax.ShapeDtypeStruct((M, N), x.dtype),
        grid_spec=pltpu.PrefetchScalarGridSpec(
            num_scalar_prefetch=0,
            grid=grid,
            in_specs=in_specs,
            out_specs=out_specs,
            scratch_shapes=scratch_shapes,
        ),
        compiler_params=pltpu.CompilerParams(
            dimension_semantics=dim_sem,
            vmem_limit_bytes=plan["vmem_limit"],
        ),
        cost_estimate=cost,
    )(x, wt, b2)


# --------------------------------------------------------------------------- demo


def _ref(x, weight, bias):
    return jnp.dot(x, weight.T, precision=jax.lax.Precision.HIGHEST) + bias


def _make_params(key, input_size, num_classes):
    kw, kb = jax.random.split(key)
    bound = 1.0 / jnp.sqrt(jnp.float32(input_size))
    weight = jax.random.uniform(kw, (num_classes, input_size), jnp.float32,
                                minval=-bound, maxval=bound)
    bias = jax.random.uniform(kb, (num_classes,), jnp.float32,
                              minval=-bound, maxval=bound)
    return weight, bias


if __name__ == "__main__":
    key = jax.random.PRNGKey(0)
    k0, k1, k2, k3, k4, k5 = jax.random.split(key, 6)

    # Primary: small shapes consistent with SVM(input_size, num_classes).
    batch, input_size, num_classes = 64, 32, 16
    x = jax.random.normal(k0, (batch, input_size), dtype=jnp.float32)
    weight, bias = _make_params(k1, input_size, num_classes)
    y = jax.block_until_ready(svm_forward(x, weight, bias))
    assert y.shape == (batch, num_classes)
    assert jnp.allclose(y, _ref(x, weight, bias), atol=1e-5, rtol=1e-5)

    # Exercise the tiled-K (accumulator) path with an exact-divisor K tile.
    x2 = jax.random.normal(k2, (batch, 256), dtype=jnp.float32)
    w2, b2 = _make_params(k3, 256, num_classes)
    y2 = jax.block_until_ready(svm_forward(x2, w2, b2, tk=128))
    assert jnp.allclose(y2, _ref(x2, w2, b2), atol=1e-4, rtol=1e-5)

    # Exercise the tiled-K path with a partial last tile (weight K-pad + x tail mask).
    x3 = jax.random.normal(k4, (batch, 200), dtype=jnp.float32)
    w3, b3 = _make_params(k5, 200, num_classes)
    y3 = jax.block_until_ready(svm_forward(x3, w3, b3, tk=128))
    assert jnp.allclose(y3, _ref(x3, w3, b3), atol=1e-4, rtol=1e-5)

    print("KERNEL_OK")
</pallas_src>

<mosaic_0001>
module attributes {stable_mosaic.version = 11 : i64} {
  func.func @_svm_kernel_single(%arg0: i32, %arg1: memref<32x32xf32, #tpu.memory_space<vmem>>, %arg2: memref<32x16xf32, #tpu.memory_space<vmem>>, %arg3: memref<1x16xf32, #tpu.memory_space<vmem>>, %arg4: memref<32x16xf32, #tpu.memory_space<vmem>>) attributes {dimension_semantics = [#tpu.dimension_semantics<parallel>], iteration_bounds = array<i64: 2>, scalar_prefetch = 0 : i64, scratch_operands = 0 : i64, tpu.core_type = #tpu.core_type<tc>, window_params = [{transform_indices = @transform_0, window_bounds = array<i64: 32, 32>}, {pipeline_mode = #tpu.pipeline_mode<synchronous>, transform_indices = @transform_1, window_bounds = array<i64: 32, 16>}, {pipeline_mode = #tpu.pipeline_mode<synchronous>, transform_indices = @transform_2, window_bounds = array<i64: 1, 16>}, {transform_indices = @transform_3, window_bounds = array<i64: 32, 16>}]} {
    %c0 = arith.constant 0 : index
    %c0_0 = arith.constant 0 : index
    %0 = vector.load %arg1[%c0, %c0_0] : memref<32x32xf32, #tpu.memory_space<vmem>>, vector<32x32xf32>
    %c0_1 = arith.constant 0 : index
    %c0_2 = arith.constant 0 : index
    %1 = vector.load %arg2[%c0_1, %c0_2] : memref<32x16xf32, #tpu.memory_space<vmem>>, vector<32x16xf32>
    %cst = arith.constant dense<0.000000e+00> : vector<32x16xf32>
    %2 = tpu.matmul %0, %1, %cst {dimension_numbers = #tpu.dot_dimension_numbers<[1], [0], [0], [1], [0, 0, 1, 1], [], []>} : vector<32x32xf32>, vector<32x16xf32>, vector<32x16xf32> -> vector<32x16xf32>
    %c0_3 = arith.constant 0 : index
    %c0_4 = arith.constant 0 : index
    %3 = vector.load %arg3[%c0_3, %c0_4] : memref<1x16xf32, #tpu.memory_space<vmem>>, vector<1x16xf32>
    %4 = vector.broadcast %3 : vector<1x16xf32> to vector<32x16xf32>
    %5 = arith.addf %2, %4 : vector<32x16xf32>
    %c0_5 = arith.constant 0 : index
    %c0_6 = arith.constant 0 : index
    %6 = vector.load %arg4[%c0_5, %c0_6] : memref<32x16xf32, #tpu.memory_space<vmem>>, vector<32x16xf32>
    tpu.vector_store %arg4[%c0_5, %c0_6], %5 {strides = array<i32>} : memref<32x16xf32, #tpu.memory_space<vmem>>, vector<32x16xf32>,
    return
  }
  func.func @transform_0(%arg0: i32) -> (i32, i32) {
    %c0_i32 = arith.constant 0 : i32
    %c0_i32_0 = arith.constant 0 : i32
    return %arg0, %c0_i32 : i32, i32
  }
  func.func @transform_1(%arg0: i32) -> (i32, i32) {
    %c0_i32 = arith.constant 0 : i32
    %c0_i32_0 = arith.constant 0 : i32
    %c0_i32_1 = arith.constant 0 : i32
    return %c0_i32, %c0_i32_0 : i32, i32
  }
  func.func @transform_2(%arg0: i32) -> (i32, i32) {
    %c0_i32 = arith.constant 0 : i32
    %c0_i32_0 = arith.constant 0 : i32
    %c0_i32_1 = arith.constant 0 : i32
    return %c0_i32, %c0_i32_0 : i32, i32
  }
  func.func @transform_3(%arg0: i32) -> (i32, i32) {
    %c0_i32 = arith.constant 0 : i32
    %c0_i32_0 = arith.constant 0 : i32
    return %arg0, %c0_i32 : i32, i32
  }
}

</mosaic_0001>

<bundles_post_ra>
// kernel: tpu_custom_call.1
= control target key start
LH: loop header
LB: loop body
LE: loop exit
PB: predicated region body
PF: predicated region fallthrough
CT: control target
= control target key end

     0   :  { %s353_s12 = smov 0   ;;  %s385_s0 = inlined_call_operand.vmem [shape: f32[64,32], index: 0, kind: input, shape index: {}]   ;;  %s386_s1 = inlined_call_operand.vmem [shape: f32[32,16], index: 1, kind: input, shape index: {}]   ;;  %s387_s2 = inlined_call_operand.vmem [shape: f32[1,16], index: 2, kind: input, shape index: {}]   ;;  %s388_s3 = inlined_call_operand.vmem [shape: f32[64,16], index: 3, kind: output, shape index: {}]  }
   0x1 LB: > { %s289_s13 = sadd.s32 4294967295, %s331_s12   ;;  %p293_p0 = scmp.ge.s32.totalorder %s331_s12, 1  ;;  %s331_s12 = sphi %s353_s12, %s13_s12  }
   0x2   : > { %p138_p1 = scmp.lt.s32.totalorder %s331_s12, 3 }
   0x4   : > { %p139_p2 = pnand %p293_p0, %p138_p1 }
   0x5   : > { %s294_s18 = sshll.u32 (!%p139_p2), %s289_s13, 2 }
   0x6   : > { %142 = sbr.rel (%p139_p2) target bundleno = 155 (0x9b), region = 32  ;;  %p163_p3 = scmp.lt.s32.totalorder (!%p139_p2), %s294_s18, 7 }
   0xb   : > { %v181_v0 = vld [vmem:[%s386_s1 + $0x18] sm:$0xff]  ;;  %v180_v1 = vld [vmem:[%s386_s1 + $0x10] sm:$0xff]  ;;  %v179_v2 = vld [vmem:[%s386_s1 + $0x8] sm:$0xff]  ;;  %s390_s18 = smov (!%p163_p3, %s294_s18), 7  ;;  %vm186_vm0 = vcmask 261120   ;;  %vm228_vm1 = vcmask 130048  }
   0xc   : > { %305 = vmatpush.msra.mxu2 %v181_v0  ;;  %306 = vmatpush.msra.mxu3 %v181_v0  ;;  %v178_v3 = vld [vmem:[%s386_s1] sm:$0xff]  ;;  %s295_s23 = sshll.u32 %s390_s18, 3 }
   0xd   : > { %211 = vmatpush.msra.mxu0 %v181_v0  ;;  %304 = vmatpush.msra.mxu1 %v181_v0  ;;  %s166_s26 = scalar_lea.vmem %s385_s0, %s295_s23  ;;  %v324_v8 = vld [vmem:[%s387_s2] ss:$0 sm:$0xff]  ;;  %s172_s4 = scalar_lea.vmem %s388_s3, %s295_s23 }
   0xe   : > { %308 = vmatpush.msra.mxu2 %v180_v1  ;;  %309 = vmatpush.msra.mxu3 %v180_v1  ;;  %v176_v4 = vld [vmem:[%s166_s26 + $0x10] sm:$0xff]  ;;  %v177_v5 = vld [vmem:[%s166_s26 + $0x18] sm:$0xff]  ;;  %v174_v6 = vld [vmem:[%s166_s26] sm:$0xff] }
   0xf   : > { %212 = vmatpush.msra.mxu0 %v180_v1  ;;  %307 = vmatpush.msra.mxu1 %v180_v1  ;;  %v175_v7 = vld [vmem:[%s166_s26 + $0x8] sm:$0xff] }
  0x10   : > { %311 = vmatpush.msra.mxu2 %v179_v2  ;;  %312 = vmatpush.msra.mxu3 %v179_v2 }
  0x11   : > { %213 = vmatpush.msra.mxu0 %v179_v2  ;;  %310 = vmatpush.msra.mxu1 %v179_v2 }
  0x12   : > { %314 = vmatpush.msra.mxu2 %v178_v3  ;;  %315 = vmatpush.msra.mxu3 %v178_v3 }
  0x13   : > { %300 = vmatmul.msk.f32.vlgmr.msra.gmra.mxu2 %vm186_vm0, %v176_v4  ;;  %301 = vmatmul.msk.f32.vlgmr.msra.gmra.mxu3 %vm186_vm0, %v177_v5 }
  0x14   : > { %214 = vmatpush.msra.mxu0 %v178_v3  ;;  %313 = vmatpush.msra.mxu1 %v178_v3 }
  0x15   : > { %298 = vmatmul.msk.f32.vlgmr.msra.gmra.mxu0 %vm186_vm0, %v174_v6  ;;  %299 = vmatmul.msk.f32.vlgmr.msra.gmra.mxu1 %vm186_vm0, %v175_v7 }
  0x92   : > { %v216_v9 = vpop.f32.mrf.mxu0  ;;  %v219_v10 = vpop.f32.mrf.mxu1 }
  0x93   : > { %v217_v11 = vadd.f32 %v324_v8, %v216_v9  ;;  %v220_v12 = vadd.f32 %v324_v8, %v219_v10 }
  0x95   : > { %229 = vst.msk [vmem:[%s172_s4] sm:$0xff] %vm228_vm1, %v217_v11 }
  0x96   : > { %230 = vst.msk [vmem:[%s172_s4 + $0x8] sm:$0xff] %vm228_vm1, %v220_v12  ;;  %v222_v13 = vpop.f32.mrf.mxu2  ;;  %v225_v14 = vpop.f32.mrf.mxu3 }
  0x97   : > { %v223_v15 = vadd.f32 %v324_v8, %v222_v13  ;;  %v226_v16 = vadd.f32 %v324_v8, %v225_v14 }
  0x99   : > { %231 = vst.msk [vmem:[%s172_s4 + $0x10] sm:$0xff] %vm228_vm1, %v223_v15 }
  0x9a   : > { %232 = vst.msk [vmem:[%s172_s4 + $0x18] sm:$0xff] %vm228_vm1, %v226_v16 }
  0x9b PF: > { %s13_s12 = sadd.s32 1, %s331_s12  }
  0x9c   : > { %p10_p4 = scmp.ge.s32.totalorder %s13_s12, 4  }
  0x9e   :  { %12 = sbr.rel (!%p10_p4) target bundleno = 1 (0x1), region = 62 }

</bundles_post_ra>
